<compile_context>
chip_gen: v6e
topology: v6e:2x2x1
jax: 0.10.0
libtpu: 0.0.40
codegen_flags: <defaults>
</compile_context>

<pallas_src>
import functools

import jax
import jax.numpy as jnp
import numpy as np
from jax.experimental import pallas as pl
from jax.experimental.pallas import tpu as pltpu

_MIB = 1 << 20
_SLAB_BUDGET_BYTES = 12 * _MIB  # input-slab target, good for v5e/v6e/v7x


# ---------------------------------------------------------------------------
# Kernel
# ---------------------------------------------------------------------------
def _downsample_kernel(selh_ref, selw_ref, x_ref, o_ref, *, s, td, use_max):
    """Pools one contiguous (td*s, Hc, Wc) slab into a (td, Ho, Wo) tile.

    selh_ref : VMEM (n_sel, Ho, Hc) -- sublane-pooling matrices
               avg: n_sel=1 block-band 0/1 matrix (sums each s-row group)
               max: n_sel=s one-hot matrices (pick row ho*s + kh)
    selw_ref : VMEM (n_sel, Wc, Wo) -- lane-pooling matrices
               avg: block-band matrix with entries 1/s^3 (scale folded in)
               max: one-hot matrices (pick column wo*s + kw)
    x_ref    : VMEM (td*s, Hc, Wc)  -- contiguous slab of the raw volume
    o_ref    : VMEM (td, Ho, Wo)    -- output tile
    """
    cdt = selh_ref.dtype
    # f32 data needs the multi-pass decomposition to keep f32 fidelity through
    # the MXU; bf16 data (max path) is exact in a single default-precision pass.
    prec = (jax.lax.Precision.HIGHEST if cdt == jnp.float32
            else jax.lax.Precision.DEFAULT)
    n_sel = selh_ref.shape[0]
    combine = jnp.maximum if use_max else jnp.add

    def body(t, carry):
        base = t * s  # multiple of s by construction
        # ---- D taps: s contiguous plane loads, combined on the VPU --------
        m = x_ref[base].astype(cdt)
        for kd in range(1, s):
            m = combine(m, x_ref[base + kd].astype(cdt))
        # ---- H (sublane) pooling: selection matmul on the idle MXU --------
        rows = None
        for k in range(n_sel):
            p = jnp.dot(selh_ref[k], m, precision=prec,
                        preferred_element_type=cdt)
            rows = p if rows is None else combine(rows, p)
        # ---- W (lane) pooling: selection matmul on the idle MXU -----------
        out_t = None
        for k in range(n_sel):
            q = jnp.dot(rows, selw_ref[k], precision=prec,
                        preferred_element_type=jnp.float32)
            out_t = q if out_t is None else combine(out_t, q)
        # Avg scale (1/s^3) already lives in selw; Conv3d bias is 0 -> skipped.
        o_ref[t] = out_t.astype(o_ref.dtype)
        return carry

    jax.lax.fori_loop(0, td, body, 0)


# ---------------------------------------------------------------------------
# Wrapper (layout glue + tiling choice only; no transposes)
# ---------------------------------------------------------------------------
def _pick_depth_tile(nb, do, s, hc, wc, itemsize,
                     slab_budget_bytes=_SLAB_BUDGET_BYTES):
    """Largest divisor of `do` whose input slab fits the VMEM slab budget while
    keeping >= 2 parallel grid steps (so both v7x TensorCores get work)."""
    best = 1
    for td in range(1, do + 1):
        if do % td:
            continue
        if td * s * hc * wc * itemsize > slab_budget_bytes:
            break                       # slab grows monotonically with td
        if nb * do >= 2 and nb * (do // td) < 2:
            continue                    # keep the megacore axis populated
        best = td
    return best


@functools.partial(jax.jit, static_argnames=("s", "use_max", "batch_mode"))
def downsample(vol, *, s, use_max=False, batch_mode=False):
    if batch_mode:
        # (N, C, D, H, W); C is folded into the batch axis (C == 1 for the conv
        # path, per the Conv3d(1, 1, ...) contract).
        n, c = vol.shape[0], vol.shape[1]
        v = vol.reshape((n * c,) + vol.shape[2:])
    else:
        # (D, H, W) -> behave like unsqueeze(unsqueeze(vol, 0), 0)[0, 0]
        v = vol[None]

    nb, d, h, w = v.shape
    do, ho, wo = d // s, h // s, w // s
    hc, wc = ho * s, wo * s
    # PyTorch conv/pool with stride=s drops the remainder.
    v = v[:, : do * s, :hc, :wc]

    in_itemsize = jnp.dtype(v.dtype).itemsize
    td = _pick_depth_tile(nb, do, s, hc, wc, in_itemsize)

    # Compute dtype for the pooling matmuls: bf16 max pooling is exact in
    # native bf16 (single MXU pass, half the cast/vreg work); everything else
    # (avg path, f32 data) runs in f32 with HIGHEST-precision matmuls.
    if use_max and v.dtype == jnp.bfloat16:
        cdt = jnp.bfloat16
    else:
        cdt = jnp.float32

    # Tiny pooling/selection matrices; resident in VMEM across all grid steps
    # (constant index_map -> no re-fetch).
    h_ids, w_ids = jnp.arange(hc), jnp.arange(wc)
    ho_ids, wo_ids = jnp.arange(ho), jnp.arange(wo)
    if use_max:
        k_ids = jnp.arange(s)
        selh = (ho_ids[None, :, None] * s + k_ids[:, None, None]
                == h_ids[None, None, :]).astype(cdt)            # (s, ho, hc)
        selw = (w_ids[None, :, None]
                == wo_ids[None, None, :] * s
                + k_ids[:, None, None]).astype(cdt)             # (s, wc, wo)
    else:
        selh = (h_ids[None, :] // s
                == ho_ids[:, None])[None].astype(cdt)           # (1, ho, hc)
        # Conv3d weight (1/s^3) folded in here; bias is 0 and skipped.
        selw = ((w_ids[:, None] // s == wo_ids[None, :])[None].astype(cdt)
                * jnp.asarray(1.0 / float(s ** 3), cdt))        # (1, wc, wo)

    out_dtype = vol.dtype
    slab_bytes = td * s * hc * wc * in_itemsize
    out_bytes = td * ho * wo * jnp.dtype(out_dtype).itemsize
    sel_bytes = (selh.size + selw.size) * jnp.dtype(cdt).itemsize
    # 2x (double buffering) for slab/out/sel + 25% headroom; floor at 32 MiB so
    # we are above the v5e/v6e scoped-VMEM defaults, and the 12 MiB slab budget
    # keeps this well under v7x's 64 MiB physical VMEM.
    vmem_limit = max(32 * _MIB,
                     int(2.5 * (slab_bytes + out_bytes + sel_bytes)))

    kernel = functools.partial(_downsample_kernel, s=s, td=td, use_max=use_max)

    out = pl.pallas_call(
        kernel,
        out_shape=jax.ShapeDtypeStruct((nb, do, ho, wo), out_dtype),
        grid_spec=pltpu.PrefetchScalarGridSpec(
            num_scalar_prefetch=0,
            grid=(nb, do // td),
            in_specs=[
                pl.BlockSpec(selh.shape, lambda b, t: (0, 0, 0)),
                pl.BlockSpec(selw.shape, lambda b, t: (0, 0, 0)),
                pl.BlockSpec((None, td * s, hc, wc),
                             lambda b, t: (b, t, 0, 0)),
            ],
            out_specs=pl.BlockSpec((None, td, ho, wo),
                                   lambda b, t: (b, t, 0, 0)),
        ),
        compiler_params=pltpu.CompilerParams(
            dimension_semantics=("parallel", "parallel"),
            vmem_limit_bytes=vmem_limit),
    )(selh, selw, v)

    if batch_mode:
        return out.reshape(n, c, do, ho, wo)
    return out[0]
    # TODO(synk): extremely large H*W planes (f32 plane > ~12 MiB / s) would
    # additionally need an H-tiled grid axis; not needed for typical renderer
    # volume sizes.


# ---------------------------------------------------------------------------
# Pure-JAX reference for verification
# ---------------------------------------------------------------------------
def _ref_pool(vol, s, use_max):
    d, h, w = vol.shape
    do, ho, wo = d // s, h // s, w // s
    v = vol[: do * s, : ho * s, : wo * s].reshape(do, s, ho, s, wo, s)
    if use_max:
        return v.max(axis=(1, 3, 5))
    return v.mean(axis=(1, 3, 5))


if __name__ == "__main__":
    key = jax.random.PRNGKey(0)
    s = 2
    D = H = W = 16
    vol = jax.random.normal(key, (D, H, W), dtype=jnp.float32)

    # Default Downsample(s): Conv3d avg-pool, batch_mode=False
    out_avg = jax.block_until_ready(downsample(vol, s=s))
    ref_avg = _ref_pool(vol, s, use_max=False)
    assert out_avg.shape == (D // s, H // s, W // s)
    np.testing.assert_allclose(np.asarray(out_avg), np.asarray(ref_avg),
                               rtol=1e-5, atol=1e-5)

    # Downsample(s, use_max=True): MaxPool3d
    out_max = jax.block_until_ready(downsample(vol, s=s, use_max=True))
    ref_max = _ref_pool(vol, s, use_max=True)
    np.testing.assert_allclose(np.asarray(out_max), np.asarray(ref_max),
                               rtol=1e-5, atol=1e-5)

    # Downsample(s, batch_mode=True): NCDHW input with C == 1
    volb = jax.random.normal(jax.random.PRNGKey(1), (2, 1, D, H, W),
                             dtype=jnp.float32)
    out_b = jax.block_until_ready(downsample(volb, s=s, batch_mode=True))
    ref_b = np.stack([_ref_pool(volb[i, 0], s, use_max=False)
                      for i in range(volb.shape[0])])[:, None]
    assert out_b.shape == (2, 1, D // s, H // s, W // s)
    np.testing.assert_allclose(np.asarray(out_b), ref_b, rtol=1e-5, atol=1e-5)

    # MaxPool3d path with bf16 input (native-dtype MXU selection path).
    volh = vol.astype(jnp.bfloat16)
    out_maxh = jax.block_until_ready(downsample(volh, s=s, use_max=True))
    ref_maxh = _ref_pool(volh.astype(jnp.float32), s, use_max=True)
    np.testing.assert_allclose(
        np.asarray(out_maxh.astype(jnp.float32)), np.asarray(ref_maxh),
        rtol=1e-2, atol=1e-2)

    print("KERNEL_OK")
</pallas_src>

<mosaic_0001>
module attributes {stable_mosaic.version = 11 : i64} {
  func.func @_downsample_kernel(%arg0: i32, %arg1: i32, %arg2: memref<1x8x16xf32, #tpu.memory_space<vmem>>, %arg3: memref<1x16x8xf32, #tpu.memory_space<vmem>>, %arg4: memref<1x8x16x16xf32, #tpu.memory_space<vmem>>, %arg5: memref<1x4x8x8xf32, #tpu.memory_space<vmem>>) attributes {dimension_semantics = [#tpu.dimension_semantics<parallel>, #tpu.dimension_semantics<parallel>], iteration_bounds = array<i64: 1, 2>, scalar_prefetch = 0 : i64, scratch_operands = 0 : i64, tpu.core_type = #tpu.core_type<tc>, window_params = [{pipeline_mode = #tpu.pipeline_mode<synchronous>, transform_indices = @transform_0, window_bounds = array<i64: 1, 8, 16>}, {pipeline_mode = #tpu.pipeline_mode<synchronous>, transform_indices = @transform_1, window_bounds = array<i64: 1, 16, 8>}, {transform_indices = @transform_2, window_bounds = array<i64: 1, 8, 16, 16>}, {transform_indices = @transform_3, window_bounds = array<i64: 1, 4, 8, 8>}]} {
    %c0_i32 = arith.constant 0 : i32
    %c4_i32 = arith.constant 4 : i32
    %0 = arith.addi %c0_i32, %c4_i32 : i32
    %c1_i32 = arith.constant 1 : i32
    scf.for %arg6 = %c0_i32 to %0 step %c1_i32  : i32 {
      %c2_i32 = arith.constant 2 : i32
      %1 = arith.muli %arg6, %c2_i32 : i32
      %c0 = arith.constant 0 : index
      %2 = arith.index_cast %1 : i32 to index
      %c0_1 = arith.constant 0 : index
      %c0_2 = arith.constant 0 : index
      %3 = vector.load %arg4[%c0, %2, %c0_1, %c0_2] : memref<1x8x16x16xf32, #tpu.memory_space<vmem>>, vector<1x1x16x16xf32>
      %4 = vector.shape_cast %3 : vector<1x1x16x16xf32> to vector<16x16xf32>
      %c1_i32_3 = arith.constant 1 : i32
      %5 = arith.addi %1, %c1_i32_3 : i32
      %c0_4 = arith.constant 0 : index
      %6 = arith.index_cast %5 : i32 to index
      %c0_5 = arith.constant 0 : index
      %c0_6 = arith.constant 0 : index
      %7 = vector.load %arg4[%c0_4, %6, %c0_5, %c0_6] : memref<1x8x16x16xf32, #tpu.memory_space<vmem>>, vector<1x1x16x16xf32>
      %8 = vector.shape_cast %7 : vector<1x1x16x16xf32> to vector<16x16xf32>
      %9 = arith.addf %4, %8 : vector<16x16xf32>
      %c0_7 = arith.constant 0 : index
      %c0_8 = arith.constant 0 : index
      %c0_9 = arith.constant 0 : index
      %10 = vector.load %arg2[%c0_7, %c0_8, %c0_9] : memref<1x8x16xf32, #tpu.memory_space<vmem>>, vector<1x8x16xf32>
      %11 = vector.shape_cast %10 : vector<1x8x16xf32> to vector<8x16xf32>
      %cst = arith.constant dense<0.000000e+00> : vector<8x16xf32>
      %12 = tpu.matmul %11, %9, %cst {dimension_numbers = #tpu.dot_dimension_numbers<[1], [0], [0], [1], [0, 0, 1, 1], [], []>, precision = #tpu.contract_precision<fp32>} : vector<8x16xf32>, vector<16x16xf32>, vector<8x16xf32> -> vector<8x16xf32>
      %c0_10 = arith.constant 0 : index
      %c0_11 = arith.constant 0 : index
      %c0_12 = arith.constant 0 : index
      %13 = vector.load %arg3[%c0_10, %c0_11, %c0_12] : memref<1x16x8xf32, #tpu.memory_space<vmem>>, vector<1x16x8xf32>
      %14 = vector.shape_cast %13 : vector<1x16x8xf32> to vector<16x8xf32>
      %cst_13 = arith.constant dense<0.000000e+00> : vector<8x8xf32>
      %15 = tpu.matmul %12, %14, %cst_13 {dimension_numbers = #tpu.dot_dimension_numbers<[1], [0], [0], [1], [0, 0, 1, 1], [], []>, precision = #tpu.contract_precision<fp32>} : vector<8x16xf32>, vector<16x8xf32>, vector<8x8xf32> -> vector<8x8xf32>
      %c0_14 = arith.constant 0 : index
      %16 = arith.index_cast %arg6 : i32 to index
      %c0_15 = arith.constant 0 : index
      %c0_16 = arith.constant 0 : index
      %17 = vector.load %arg5[%c0_14, %16, %c0_15, %c0_16] : memref<1x4x8x8xf32, #tpu.memory_space<vmem>>, vector<1x1x8x8xf32>
      %18 = vector.shape_cast %17 : vector<1x1x8x8xf32> to vector<8x8xf32>
      %19 = vector.shape_cast %15 : vector<8x8xf32> to vector<1x1x8x8xf32>
      tpu.vector_store %arg5[%c0_14, %16, %c0_15, %c0_16], %19 {strides = array<i32>} : memref<1x4x8x8xf32, #tpu.memory_space<vmem>>, vector<1x1x8x8xf32>,
    }
    %c4_i32_0 = arith.constant 4 : i32
    return
  }
  func.func @transform_0(%arg0: i32, %arg1: i32) -> (i32, i32, i32) {
    %c0_i32 = arith.constant 0 : i32
    %c0_i32_0 = arith.constant 0 : i32
    %c0_i32_1 = arith.constant 0 : i32
    %c0_i32_2 = arith.constant 0 : i32
    return %c0_i32, %c0_i32_0, %c0_i32_1 : i32, i32, i32
  }
  func.func @transform_1(%arg0: i32, %arg1: i32) -> (i32, i32, i32) {
    %c0_i32 = arith.constant 0 : i32
    %c0_i32_0 = arith.constant 0 : i32
    %c0_i32_1 = arith.constant 0 : i32
    %c0_i32_2 = arith.constant 0 : i32
    return %c0_i32, %c0_i32_0, %c0_i32_1 : i32, i32, i32
  }
  func.func @transform_2(%arg0: i32, %arg1: i32) -> (i32, i32, i32, i32) {
    %c0_i32 = arith.constant 0 : i32
    %c0_i32_0 = arith.constant 0 : i32
    %c0_i32_1 = arith.constant 0 : i32
    return %arg0, %arg1, %c0_i32, %c0_i32_0 : i32, i32, i32, i32
  }
  func.func @transform_3(%arg0: i32, %arg1: i32) -> (i32, i32, i32, i32) {
    %c0_i32 = arith.constant 0 : i32
    %c0_i32_0 = arith.constant 0 : i32
    %c0_i32_1 = arith.constant 0 : i32
    return %arg0, %arg1, %c0_i32, %c0_i32_0 : i32, i32, i32, i32
  }
}

</mosaic_0001>

<bundles_post_ra>
// kernel: downsample.1
= control target key start
LH: loop header
LB: loop body
LE: loop exit
PB: predicated region body
PF: predicated region fallthrough
CT: control target
= control target key end

     0   :  { %8 = vsyncpa [#allocation3], 0  ;;  %s1869_s0 = inlined_call_operand.vmem [shape: f32[1,8,16], index: 0, kind: input, shape index: {}]   ;;  %s1870_s1 = inlined_call_operand.vmem [shape: f32[1,16,8], index: 1, kind: input, shape index: {}]   ;;  %s1871_s2 = inlined_call_operand.hbm [shape: f32[1,16,16,16], index: 2, kind: input, shape index: {}]   ;;  %s1872_s3 = inlined_call_operand.hbm [shape: f32[1,8,8,8], index: 3, kind: output, shape index: {}]  }
   0x1   :  { %10 = vsyncpa [#allocation3 + $0x1], 0 }
   0x2   :  { %11 = vsyncpa [#allocation4], 0 }
   0x3   :  { %13 = vsyncpa [#allocation4 + $0x1], 0  ;;  %s1646_s12 = smov 0   ;;  %s1648_s13 = smov 0  }
   0x4   :  { %s1650_s14 = smov 0   ;;  %s1652_s15 = smov 0  }
   0x5   :  { %s1654_s16 = smov 0   ;;  %s1656_s17 = smov 0  }
   0x6 LB: > { %s1276_s18 = sadd.s32 4294967295, %s1612_s17   ;;  %s1277_s19 = sadd.s32 4294967294, %s1612_s17   ;;  %s1612_s17 = sphi %s1656_s17, %s19_s17   ;;  %s1608_s16 = sphi %s1654_s16, %s1883_s16   ;;  %s1604_s15 = sphi %s1652_s15, %s1882_s15   ;;  %s1600_s14 = sphi %s1650_s14, %s1881_s14   ;;  %s1596_s13 = sphi %s1648_s13, %s1880_s13   ;;  %s1592_s12 = sphi %s1646_s12, %s1879_s12  }
   0x7   : > { %s28_s20 = sadd.s32 1, %s1608_s16  ;;  %s82_s21 = sadd.s32 1, %s1600_s14 }
   0x8   : > { %p29_p0 = scmp.ge.s32.totalorder %s28_s20, 2  ;;  %p89_p1 = scmp.ne.s32.totalorder %s1600_s14, %s1596_s13 }
   0x9   : > { %p90_p2 = scmp.eq.s32.totalorder %s1612_s17, 0  ;;  %p95_p3 = scmp.ne.s32.totalorder %s1596_s13, %s1592_s12 }
   0xa   : > { %s1885_s20 = smov (%p29_p0, %s28_s20), 0  ;;  %p96_p5 = scmp.eq.s32.totalorder %s1276_s18, 0 }
   0xb   : > { %p1687_p4 = por %p90_p2, %p89_p1  ;;  %s78_s23 = ssub.s32 %s1608_s16, %s1885_s20 }
   0xc   : > { %p121_p6 = scmp.eq.s32.totalorder %s1276_s18, 1  ;;  %p80_p7 = scmp.eq.s32.totalorder %s78_s23, 0 }
   0xd   : > { %p1693_p8 = por %p96_p5, %p95_p3  ;;  %p127_p10 = scmp.eq.s32.totalorder %s1277_s19, 1 }
   0xe   : > { %p1697_p9 = por %p121_p6, %p89_p1  ;;  %p1436_p13 = scmp.lt.s32.totalorder %s1612_s17, 2 }
   0xf   : > { %s1702_s26 = scalar_select %p80_p7, %s1600_s14, %s82_s21  }
  0x10   : > { %p1704_p11 = por %p127_p10, %p95_p3  ;;  %s153_s28 = sand.u32 1, %s1600_s14  }
  0x11   : > { %s1280_s29 = sshll.u32 %s153_s28, 7  ;;  %s1300_s30 = sshll.u32 %s1608_s16, 11 }
  0x12   : > { %s166_s6 = scalar_lea.hbm %s1871_s2, %s1300_s30  ;;  %s157_s7 = scalar_lea.vmem [#allocation2], %s1280_s29 }
  0x13   : > { %s167_s8 = sshll.u32 %s157_s7, 4  ;;  %p1717_p0 = pnand %p1436_p13, %p1687_p4  ;;  %s168_s8 = int_to_ptr.vmem [resolvable:$true] %s167_s8 }
  0x14   : > { %p1284_p1 = scmp.ge.s32.totalorder %s1612_s17, 1  ;;  %s154_s10 = scalar_lea.sflag [#allocation3], %s153_s28 }
  0x15   : > { %p1502_p2 = pneg %p1717_p0  ;;  %s1513_s11 = scalar_lea.vmem %s168_s8, 2048 }
  0x16   : > { %p1514_p3 = scmp.ne.s32.totalorder %s168_s8, %s1513_s11  ;;  %s1618_s18 = smov [#allocation2]  }
  0x17   : > { %s1518_s19 = sshll.u32 %s1618_s18, 4  ;;  %s1519_s19 = int_to_ptr.vmem [resolvable:$false] %s1518_s19 }
  0x18   : > { %p1516_p5 = pnand %p1514_p3, %p1502_p2  ;;  %s1520_s21 = scalar_lea.vmem %s1519_s19, 4096 }
  0x19   : > { %p1521_p7 = scmp.lt.s32.totalorder %s168_s8, %s1519_s19  ;;  %p1522_p10 = scmp.lt.s32.totalorder %s1520_s21, %s1513_s11 }
  0x1a   : > { %p1517_p6 = pneg %p1516_p5 }
  0x1b   : > { %p1523_p12 = por %p1522_p10, %p1521_p7 }
  0x1d   : > { %p1524_p4 = pnand %p1523_p12, %p1517_p6 }
  0x1f   : > { %1527 = shalt.err (!%p1524_p4)
}
  0x20   : > { %s1619_s22 = smov 128   ;;  %s1620_s23 = smov 8  }
  0x21   : > { %1431 = dma.hbm_to_vmem [thread:$0]  (!%p1717_p0), %s166_s6, 2048, %s168_s8, %s154_s10, %s1619_s22, %s1619_s22, %s1620_s23  }
  0x22   : > { %p175_p13 = scmp.lt.s32.totalorder %s1612_s17, 3 }
  0x24   : > { %p176_p2 = pnand %p1284_p1, %p175_p13 }
  0x25   : > { %s1730_s28 = sand.u32 (!%p176_p2), 1, %s1596_s13  }
  0x26   : > { %179 = sbr.rel (%p176_p2) target bundleno = 499 (0x1f3), region = 32  ;;  %s1285_s29 = sshll.u32 (!%p176_p2), %s1730_s28, 7 }
  0x27   : > { %s182_s30 = scalar_lea.sflag (!%p176_p2), [#allocation3], %s1730_s28  ;;  %s1734_s4 = scalar_lea.vmem (!%p176_p2), [#allocation2], %s1285_s29 }
  0x2b   : > { %1583 = dma.done.wait (%p1693_p8), %s182_s30, 2048  }
  0x2c   : > { %1585 = vsyncadd (%p1693_p8), %s182_s30, 4294965248  ;;  %s1286_s5 = sshll.u32 %s1730_s28, 5  ;;  %s1743_s7 = smov 0  }
  0x2d   : > { %s1741_s6 = scalar_lea.vmem [#allocation5], %s1286_s5 }
  0x2e LB: >> { %v228_v0 = vld [vmem:[%s1869_s0] sm:$0xff]  ;;  %vm229_vm0 = vcmask 130048   ;;  %v1621_v1 = vmov 0.0   ;;  %vm1622_vm1 = vmmov 0   ;;  %s1301_s24 = sshll.u32 %s1616_s7, 5  ;;  %v693_v24 = vld [vmem:[%s1870_s1 + $0x8] sm:$0xff]  ;;  %s1616_s7 = sphi %s1743_s7, %s215_s7  }
  0x2f   : >> { %1340 = vmatprep.subr.mxu0 %v1621_v1  ;;  %1344 = vmatprep.mubr.msk.f32.mxu0 %vm1622_vm1, %v1621_v1  ;;  %v231_v2 = vsel %vm229_vm0, %v228_v0, 0  ;;  %s218_s10 = scalar_lea.vmem %s1734_s4, %s1301_s24 [#allocation2]  ;;  %v726_v25 = vand.u32 4294901760, %v693_v24  ;;  %v692_v26 = vld [vmem:[%s1870_s1] sm:$0xff]  ;;  %s1293_s22 = sshll.u32 %s1616_s7, 3  ;;  %vm1158_vm2 = vcmask 64512  }
  0x30   : >> { %1347 = vmatprep.subr.mxu1 %v1621_v1  ;;  %v300_v3 = vand.u32 4294901760, %v231_v2  ;;  %1351 = vmatprep.mubr.msk.f32.mxu1 %vm1622_vm1, %v1621_v1  ;;  %v220_v4 = vld [vmem:[%s218_s10 + $0x8] sm:$0xff]  ;;  %v1292_v5 = vld [vmem:[%s218_s10 + $0x18] sm:$0xff]  ;;  %v219_v6 = vld [vmem:[%s218_s10] sm:$0xff]  ;;  %v729_v28 = vand.u32 4294901760, %v692_v26  ;;  %s1157_s23 = scalar_lea.vmem %s1741_s6, %s1293_s22 [#allocation5]  ;;  %s215_s7 = sadd.s32 1, %s1616_s7  }
  0x31   : >> { %v227_v8 = vadd.f32 %v1292_v5, %v220_v4  ;;  %v1291_v9 = vld [vmem:[%s218_s10 + $0x10] sm:$0xff]  ;;  %v804_v27 = vsub.f32 %v693_v24, %v726_v25  ;;  %p212_p8 = scmp.ge.s32.totalorder %s215_s7, 4  }
  0x32   : >> { %v301_v7 = vsub.f32 %v231_v2, %v300_v3  ;;  %v226_v10 = vadd.f32 %v1291_v9, %v219_v6  ;;  %v811_v30 = vsub.f32 %v692_v26, %v729_v28  ;;  %s1303_s29 = sshll.u32 (%p212_p8), %s1604_s15, 9  ;;  %s1176_s9 = sshll.u32 (%p212_p8), %s1741_s6, 4  ;;  %s1821_s9 = int_to_ptr.vmem [resolvable:$true] %s1176_s9 }
  0x33   : >> { %v262_v12 = vand.u32 4294901760, %v227_v8  ;;  %v805_v29 = vand.u32 4294901760, %v804_v27  ;;  %s1818_s8 = scalar_lea.hbm (%p212_p8), %s1872_s3, %s1303_s29  ;;  %s1161_s24 = scalar_lea.sflag (%p212_p8), [#allocation4], %s1730_s28 }
  0x34   : >> { %v302_v11 = vand.u32 4294901760, %v301_v7  ;;  %v265_v13 = vand.u32 4294901760, %v226_v10  ;;  %v812_v32 = vand.u32 4294901760, %v811_v30  ;;  %s1528_s10 = scalar_lea.vmem (%p212_p8), %s1821_s9, 512  ;;  %s1623_s4 = smov (%p212_p8), [#allocation5]  }
  0x35   : >> { %1341 = vmatpush3.msra.mxu0 %v262_v12  ;;  %v340_v15 = vsub.f32 %v227_v8, %v262_v12  ;;  %v806_v31 = vsub.f32 %v804_v27, %v805_v29  ;;  %p1529_p12 = scmp.ne.s32.totalorder (%p212_p8), %s1821_s9, %s1528_s10  ;;  %s1532_s7 = sshll.u32 (%p212_p8), %s1623_s4, 4  ;;  %s1533_s7 = int_to_ptr.vmem [resolvable:$false] %s1532_s7 }
  0x36   : >> { %v303_v14 = vsub.f32 %v301_v7, %v302_v11  ;;  %1342 = vmatprep.subr.mxu0 %v1621_v1  ;;  %v347_v17 = vsub.f32 %v226_v10, %v265_v13  ;;  %v813_v34 = vsub.f32 %v811_v30, %v812_v32  ;;  %s1534_s15 = scalar_lea.vmem (%p212_p8), %s1533_s7, 1024  ;;  %p1535_p3 = scmp.lt.s32.totalorder (%p212_p8), %s1821_s9, %s1533_s7 }
  0x37   : >> { %1343 = vmatpush3.msra.mxu0 %v265_v13  ;;  %v341_v18 = vand.u32 4294901760, %v340_v15  ;;  %v807_v33 = vand.u32 4294901760, %v806_v31  ;;  %p1530_p0 = pnand (%p212_p8), %p1529_p12, %p1697_p9  ;;  %p1536_p5 = scmp.lt.s32.totalorder (%p212_p8), %s1534_s15, %s1528_s10 }
  0x38   : >> { %v304_v16 = vand.u32 4294901760, %v303_v14  ;;  %1354 = vmatprep.subr.mxu0 %v1621_v1  ;;  %v348_v19 = vand.u32 4294901760, %v347_v17  ;;  %v814_v35 = vand.u32 4294901760, %v813_v34 }
  0x39   : >> { %v342_v20 = vsub.f32 %v340_v15, %v341_v18  ;;  %p1531_p1 = pneg (%p212_p8), %p1530_p0  ;;  %p1537_p6 = por (%p212_p8), %p1536_p5, %p1535_p3 }
  0x3a   : >> { %1345 = vmatmul.mubr.f32.vlgmr.msra.gmra.mxu0 %v304_v16  ;;  %v349_v21 = vsub.f32 %v347_v17, %v348_v19 }
  0x3b   : >> { %1355 = vmatpush3.msra.mxu0 %v340_v15  ;;  %1358 = vmatprep.mubr.msk.f32.mxu0 %vm1622_vm1, %v1621_v1  ;;  %v343_v22 = vand.u32 4294901760, %v342_v20  ;;  %p1538_p7 = pnand (%p212_p8), %p1537_p6, %p1531_p1 }
  0x3c   : >> { %1356 = vmatprep.subr.mxu0 %v1621_v1  ;;  %v350_v23 = vand.u32 4294901760, %v349_v21 }
  0x3d   : >> { %1357 = vmatpush3.msra.mxu0 %v347_v17  ;;  %1348 = vmatpush3.msra.mxu1 %v343_v22 }
  0x3e   : >> { %1359 = vmatmul.mubr.f32.vlgmr.msra.gmra.mxu0 %v301_v7  ;;  %1368 = vmatprep.subr.mxu0 %v1621_v1 }
  0x3f   : >> { %1369 = vmatpush3.msra.mxu0 %v341_v18  ;;  %1349 = vmatprep.subr.mxu1 %v1621_v1 }
  0x40   : >> { %1370 = vmatprep.subr.mxu0 %v1621_v1  ;;  %1350 = vmatpush3.msra.mxu1 %v350_v23 }
  0x41   : >> { %1371 = vmatpush3.msra.mxu0 %v348_v19  ;;  %1352 = vmatmul.mubr.f32.vlgmr.msra.gmra.mxu1 %v300_v3 }
  0x42   : >> { %1361 = vmatprep.subr.mxu1 %v1621_v1  ;;  %1365 = vmatprep.mubr.msk.f32.mxu1 %vm1622_vm1, %v1621_v1 }
  0x43   : >> { %1362 = vmatpush3.msra.mxu1 %v262_v12  ;;  %1372 = vmatprep.mubr.msk.f32.mxu0 %vm1622_vm1, %v1621_v1 }
  0x44   : >> { %1363 = vmatprep.subr.mxu1 %v1621_v1  ;;  %1373 = vmatmul.mubr.f32.vlgmr.msra.gmra.mxu0 %v300_v3 }
  0x45   : >> { %1364 = vmatpush3.msra.mxu1 %v265_v13  ;;  %1382 = vmatprep.subr.mxu0 %v1621_v1 }
  0x46   : >> { %1366 = vmatmul.mubr.f32.vlgmr.msra.gmra.mxu1 %v302_v11  ;;  %1375 = vmatprep.subr.mxu1 %v1621_v1 }
  0x47   : >> { %1376 = vmatpush3.msra.mxu1 %v262_v12  ;;  %1379 = vmatprep.mubr.msk.f32.mxu1 %vm1622_vm1, %v1621_v1 }
  0x48   : >> { %1377 = vmatprep.subr.mxu1 %v1621_v1  ;;  %1386 = vmatprep.mubr.msk.f32.mxu0 %vm1622_vm1, %v1621_v1 }
  0x49   : >> { %1378 = vmatpush3.msra.mxu1 %v265_v13  ;;  %1383 = vmatpush3.msra.mxu0 %v726_v25 }
  0x4a   : >> { %1380 = vmatmul.mubr.f32.vlgmr.msra.gmra.mxu1 %v300_v3  ;;  %1389 = vmatprep.subr.mxu1 %v1621_v1 }
  0x4b   : >> { %1393 = vmatprep.mubr.msk.f32.mxu1 %vm1622_vm1, %v1621_v1  ;;  %1384 = vmatprep.subr.mxu0 %v1621_v1 }
  0x4c   : >> { %1385 = vmatpush3.msra.mxu0 %v729_v28  ;;  %1390 = vmatpush3.msra.mxu1 %v807_v33 }
  0x4d   : >> { %1396 = vmatprep.subr.mxu0 %v1621_v1  ;;  %1391 = vmatprep.subr.mxu1 %v1621_v1 }
  0x4e   : >> { %1392 = vmatpush3.msra.mxu1 %v814_v35 }
  0x4f   : >> { %1403 = vmatprep.subr.mxu1 %v1621_v1 }
  0xfa   : >> { %v306_v36 = vpop.f32.mrf.mxu0 }
  0xfc   : >> { %v1346_v37 = vpop.f32.mrf.mxu0 }
  0xfe   : >> { %v463_v38 = vpop.f32.mrf.mxu0 }
 0x100   : >> { %v1360_v39 = vpop.f32.mrf.mxu0 }
 0x101   : >> { %v387_v40 = vpop.f32.mrf.mxu1 }
 0x102   : >> { %v388_v41 = vadd.f32 %v387_v40, %v306_v36 }
 0x103   : >> { %v1353_v42 = vpop.f32.mrf.mxu1 }
 0x104   : >> { %v464_v43 = vadd.f32 %v463_v38, %v388_v41  ;;  %v615_v44 = vpop.f32.mrf.mxu0 }
 0x106   : >> { %v538_v45 = vpop.f32.mrf.mxu1  ;;  %v1374_v47 = vpop.f32.mrf.mxu0 }
 0x107   : >> { %v539_v46 = vadd.f32 %v538_v45, %v464_v43 }
 0x108   : >> { %v1367_v48 = vpop.f32.mrf.mxu1 }
 0x109   : >> { %v616_v49 = vadd.f32 %v615_v44, %v539_v46 }
 0x10a   : >> { %v688_v50 = vpop.f32.mrf.mxu1 }
 0x10b   : >> { %v689_v51 = vadd.f32 %v688_v50, %v616_v49 }
 0x10c   : >> { %v1381_v52 = vpop.f32.mrf.mxu1 }
 0x10d   : >> { %v695_v53 = vsel %vm229_vm0, %v689_v51, 0 }
 0x10e   : >> { %v764_v54 = vand.u32 4294901760, %v695_v53 }
 0x110   : >> { %v765_v55 = vsub.f32 %v695_v53, %v764_v54  ;;  %1394 = vmatmul.mubr.f32.vlgmr.msra.gmra.mxu1 %v764_v54 }
 0x111   : >> { %1404 = vmatpush3.msra.mxu1 %v726_v25  ;;  %1407 = vmatprep.mubr.msk.f32.mxu1 %vm1622_vm1, %v1621_v1 }
 0x112   : >> { %1405 = vmatprep.subr.mxu1 %v1621_v1  ;;  %v766_v56 = vand.u32 4294901760, %v765_v55 }
 0x113   : >> { %1406 = vmatpush3.msra.mxu1 %v729_v28 }
 0x114   : >> { %1408 = vmatmul.mubr.f32.vlgmr.msra.gmra.mxu1 %v766_v56  ;;  %1417 = vmatprep.subr.mxu1 %v1621_v1  ;;  %v767_v57 = vsub.f32 %v765_v55, %v766_v56 }
 0x115   : >> { %1418 = vmatpush3.msra.mxu1 %v726_v25  ;;  %1421 = vmatprep.mubr.msk.f32.mxu1 %vm1622_vm1, %v1621_v1 }
 0x116   : >> { %1419 = vmatprep.subr.mxu1 %v1621_v1  ;;  %v768_v58 = vand.u32 4294901760, %v767_v57 }
 0x117   : >> { %1420 = vmatpush3.msra.mxu1 %v729_v28 }
 0x118   : >> { %1387 = vmatmul.mubr.f32.vlgmr.msra.gmra.mxu0 %v768_v58  ;;  %1422 = vmatmul.mubr.f32.vlgmr.msra.gmra.mxu1 %v764_v54 }
 0x119   : >> { %1397 = vmatpush3.msra.mxu0 %v804_v27  ;;  %1400 = vmatprep.mubr.msk.f32.mxu0 %vm1622_vm1, %v1621_v1 }
 0x11a   : >> { %1398 = vmatprep.subr.mxu0 %v1621_v1 }
 0x11b   : >> { %1399 = vmatpush3.msra.mxu0 %v811_v30 }
 0x11c   : >> { %1401 = vmatmul.mubr.f32.vlgmr.msra.gmra.mxu0 %v765_v55  ;;  %1410 = vmatprep.subr.mxu0 %v1621_v1 }
 0x11d   : >> { %1411 = vmatpush3.msra.mxu0 %v805_v29  ;;  %1414 = vmatprep.mubr.msk.f32.mxu0 %vm1622_vm1, %v1621_v1 }
 0x11e   : >> { %1412 = vmatprep.subr.mxu0 %v1621_v1 }
 0x11f   : >> { %1413 = vmatpush3.msra.mxu0 %v812_v32 }
 0x120   : >> { %1415 = vmatmul.mubr.f32.vlgmr.msra.gmra.mxu0 %v764_v54 }
 0x1d0   : >> { %v851_v59 = vpop.f32.mrf.mxu1 }
 0x1d2   : >> { %v1395_v60 = vpop.f32.mrf.mxu1 }
 0x1d4   : >> { %v1002_v61 = vpop.f32.mrf.mxu1 }
 0x1d6   : >> { %v1409_v62 = vpop.f32.mrf.mxu1 }
 0x1d8   : >> { %v770_v63 = vpop.f32.mrf.mxu0  ;;  %v1152_v0 = vpop.f32.mrf.mxu1 }
 0x1d9   : >> { %v852_v4 = vadd.f32 %v851_v59, %v770_v63 }
 0x1da   : >> { %v1388_v2 = vpop.f32.mrf.mxu0  ;;  %v1423_v3 = vpop.f32.mrf.mxu1 }
 0x1dc   : >> { %v927_v5 = vpop.f32.mrf.mxu0 }
 0x1dd   : >> { %v928_v6 = vadd.f32 %v927_v5, %v852_v4 }
 0x1de   : >> { %v1402_v7 = vpop.f32.mrf.mxu0 }
 0x1df   : >> { %v1003_v8 = vadd.f32 %v1002_v61, %v928_v6 }
 0x1e0   : >> { %v1079_v9 = vpop.f32.mrf.mxu0 }
 0x1e1   : >> { %v1080_v1 = vadd.f32 %v1079_v9, %v1003_v8  ;;  %214 = sbr.rel (!%p212_p8) target bundleno = 46 (0x2e), region = 87 }
 0x1e2   : >> { %v1416_v10 = vpop.f32.mrf.mxu0 }
 0x1e3   : >> { %v1153_v11 = vadd.f32 %v1152_v0, %v1080_v1 }
 0x1e5   : >> { %1159 = vst.msk [vmem:[%s1157_s23] sm:$0xff] %vm1158_vm2, %v1153_v11 }
 0x1e6   : > { %1541 = shalt.err (!%p1538_p7)
}
 0x1e7   : > { %s1542_s6 = scalar_lea.hbm %s1818_s8, 512  ;;  %s1546_s19 = scalar_lea.hbm %s1872_s3, 1024 }
 0x1e8   : > { %p1543_p10 = scmp.ne.s32.totalorder %s1818_s8, %s1542_s6  ;;  %p1547_p2 = scmp.lt.s32.totalorder %s1818_s8, %s1872_s3 }
 0x1e9   : > { %p1548_p8 = scmp.lt.s32.totalorder %s1546_s19, %s1542_s6 }
 0x1ea   : > { %p1544_p4 = pnand %p1543_p10, %p1697_p9 }
 0x1eb   : > { %p1549_p12 = por %p1548_p8, %p1547_p2 }
 0x1ec   : > { %p1545_p13 = pneg %p1544_p4 }
 0x1ee   : > { %p1550_p0 = pnand %p1549_p12, %p1545_p13 }
 0x1f0   : > { %1553 = shalt.err (!%p1550_p0)
}
 0x1f1   : > { %s1624_s23 = smov 128   ;;  %s1625_s29 = smov 8  }
 0x1f2   : > { %1426 = dma.vmem_to_hbm [thread:$0]  (%p1697_p9), %s1821_s9, 512, %s1818_s8, %s1161_s24, %s1624_s23, %s1624_s23, %s1625_s29  }
 0x1f3 PF: > { %s1191_s30 = sand.u32 1, %s1592_s12   ;;  %p1878_p1 = scmp.ge.s32.totalorder %s1612_s17, 2 }
 0x1f4   : > { %s1192_s5 = scalar_lea.sflag [#allocation4], %s1191_s30 }
 0x1f5   : > { %p1433_p3 = pnand %p1878_p1, %p1704_p11 }
 0x1f7   : > { %p1434_p5 = pneg %p1433_p3 }
 0x1f9   : > { %1587 = dma.done.wait (%p1434_p5), %s1192_s5, 512  }
 0x1fa   : > { %1589 = vsyncadd (%p1434_p5), %s1192_s5, 4294966784  ;;  %s19_s17 = sadd.s32 1, %s1612_s17   ;;  %s1879_s12 = smov %s1596_s13 }
 0x1fb   : > { %p16_p6 = scmp.ge.s32.totalorder %s19_s17, 4   ;;  %s1880_s13 = smov %s1600_s14 }
 0x1fc   : > { %s1881_s14 = smov %s1702_s26  ;;  %s1882_s15 = smov %s1608_s16 }
 0x1fd   : > { %s1883_s16 = smov %s1885_s20  ;;  %18 = sbr.rel (!%p16_p6) target bundleno = 6 (0x6), region = 98 }
 0x202   :  { %1197 = vsyncpa [#allocation3], 1 }
 0x203   :  { %1199 = vsyncpa [#allocation3 + $0x1], 1 }
 0x204   :  { %1200 = vsyncpa [#allocation4], 1 }
 0x205   :  { %1202 = vsyncpa [#allocation4 + $0x1], 1 }

</bundles_post_ra>
